<compile_context>
chip_gen: v6e
topology: v6e:2x2x1
jax: 0.10.0
libtpu: 0.0.40
codegen_flags: <defaults>
</compile_context>

<pallas_src>
import jax
import jax.numpy as jnp
from jax.experimental import pallas as pl
from jax.experimental.pallas import tpu as pltpu


def _make_kernel(n_pixels, tk, mask_last_k):
    """Builds the fused kernel for a given (static) K tiling."""

    def kernel(x_ref, w1_ref, b1_ref, w2t_ref, b2_ref, out_ref, acc_ref):
        # x_ref   : (tb, tk)             w1_ref : (tk, latent)
        # b1_ref  : (1, latent)          w2t_ref: (2, latent)   b2_ref: (2, 1)
        # out_ref : (2, tb) f32          acc_ref: (tb, latent) f32 scratch
        k = pl.program_id(1)

        @pl.when(k == 0)
        def _():
            acc_ref[...] = jnp.zeros_like(acc_ref)

        x = x_ref[...]
        w1 = w1_ref[...]
        if mask_last_k:
            # Ragged last K block: out-of-bounds input values are unspecified,
            # so zero both operands' OOB region before the MXU accumulate
            # (avoids 0 * NaN poisoning the reduction).
            base = k * tk
            col = jax.lax.broadcasted_iota(jnp.int32, x.shape, 1) + base
            x = jnp.where(col < n_pixels, x, 0)
            row = jax.lax.broadcasted_iota(jnp.int32, w1.shape, 0) + base
            w1 = jnp.where(row < n_pixels, w1, 0)

        acc_ref[...] += jnp.dot(x, w1, preferred_element_type=jnp.float32)

        @pl.when(k == pl.num_programs(1) - 1)
        def _():
            h = jnp.maximum(acc_ref[...] + b1_ref[...].astype(jnp.float32), 0.0)
            # fc2 as (2, latent) x (tb, latent)^T -> (2, tb): the batch axis
            # lands directly on the 128-lane axis, so the output store is a
            # full-lane (unmasked) vst.
            out = jax.lax.dot_general(
                w2t_ref[...].astype(jnp.float32), h,
                dimension_numbers=(((1,), (1,)), ((), ())),
                preferred_element_type=jnp.float32)
            out = out + b2_ref[...].astype(jnp.float32)
            # Separate row writes: softplus (EUP) only on the sd row.
            out_ref[0:1, :] = out[0:1, :]
            out_ref[1:2, :] = jax.nn.softplus(out[1:2, :]) + 1e-6

    return kernel


def _vmem_capacity_bytes():
    try:
        return int(pltpu.get_tpu_info().vmem_capacity_bytes)
    except Exception:  # non-TPU / interpret / API drift: assume v7x-sized VMEM
        return 64 << 20


def _choose_tiles(batch, n_pixels, itemsize, vmem_cap):
    """Pick (tb, tk): batch tile and reduction (n_pixels) tile."""
    small_vmem = vmem_cap <= (64 << 20)            # v7x-class part (64 MiB/TC)
    x_budget = (12 << 20) if small_vmem else (28 << 20)  # double-buffered x tile

    if batch < 128:
        # Single batch block; block dims equal the full array dims, which is
        # always layout-legal and needs no output padding.  (Multiples of 128
        # below also satisfy the bf16 16-row min tile.)
        tb = batch
    else:
        tb = 128
        for t in (2048, 1024, 512, 256):
            if batch >= t:
                tb = t
                break
        # v7x has 2 TensorCores: give the "parallel" batch axis >= 2 steps when
        # the tile can stay a multiple of 128 (keeps the (2, tb) output block
        # lane-legal without padding).
        if small_vmem and tb >= 256 and pl.cdiv(batch, tb) < 2:
            tb //= 2

    per_buf = x_budget // 2
    if tb * n_pixels * itemsize <= per_buf:
        tk = n_pixels                              # whole reduction dim fits
    else:
        tk = max(128, (per_buf // (tb * itemsize)) // 128 * 128)
        tk = min(tk, n_pixels)
    return tb, tk


def mlp_encoder(image, w1, b1, w2, b2, *, tb=None, tk=None):
    """Forward pass of MLPEncoder.

    image: (B, slen, slen); w1: (n_pixels, latent); b1: (latent,);
    w2: (latent, 2); b2: (2,).  Returns (mean, sd), each float32 of shape (B,).
    """
    B = image.shape[0]
    n_pixels, latent = w1.shape

    # Propagate low-precision inputs if both image and weights already use it;
    # accumulation is always f32 inside the kernel.
    if image.dtype == w1.dtype and image.dtype in (jnp.bfloat16, jnp.float16,
                                                   jnp.float32):
        dt = image.dtype
    else:
        dt = jnp.float32

    x = image.reshape(B, n_pixels).astype(dt)      # metadata-only reshape
    w1c = w1.astype(dt)
    b1c = b1.reshape(1, latent).astype(dt)
    w2t = w2.T.reshape(2, latent).astype(dt)
    b2c = b2.reshape(2, 1).astype(dt)

    itemsize = jnp.dtype(dt).itemsize
    vmem_cap = _vmem_capacity_bytes()
    tb_auto, tk_auto = _choose_tiles(B, n_pixels, itemsize, vmem_cap)
    if tb is None:
        tb = tb_auto
    if tk is None:
        tk = tk_auto
    tk = min(tk, n_pixels)

    nb = pl.cdiv(B, tb)
    nk = pl.cdiv(n_pixels, tk)
    mask_last_k = (n_pixels % tk) != 0

    flops = 2 * B * n_pixels * latent + 2 * B * latent * 2
    bytes_accessed = (B * n_pixels * itemsize
                      + (nb if nk > 1 else 1) * n_pixels * latent * itemsize
                      + (3 * latent + 2) * itemsize
                      + 2 * B * 4)
    cost = pl.CostEstimate(flops=flops, transcendentals=2 * B,
                           bytes_accessed=bytes_accessed)

    # Real VMEM usage estimate (no extra hedge): double-buffered x, w1 double-
    # buffered only when K-tiled, tiny single-buffered operands, pipelined
    # output, f32 accumulator scratch, plus Mosaic-internal headroom.
    vmem_est = (2 * tb * tk * itemsize
                + (2 if nk > 1 else 1) * tk * latent * itemsize
                + (3 * latent + 2) * itemsize
                + 2 * 2 * tb * 4
                + tb * latent * 4
                + (2 << 20))
    vmem_limit = int(min(max(vmem_est, 32 << 20), (3 * vmem_cap) // 4))

    kernel = _make_kernel(n_pixels, tk, mask_last_k)
    out_shape = jax.ShapeDtypeStruct((2, B), jnp.float32)
    compiler_params = pltpu.CompilerParams(
        dimension_semantics=("parallel", "arbitrary"),
        vmem_limit_bytes=vmem_limit)
    scratch = [pltpu.VMEM((tb, latent), jnp.float32)]

    def build_in_specs(single_buffer_invariants):
        inv = ({'pipeline_mode': pl.Buffered(1)}
               if single_buffer_invariants else {})
        w1_kw = inv if nk == 1 else {}   # w1 is only grid-invariant when nk == 1
        return [
            pl.BlockSpec((tb, tk), lambda i, k: (i, k)),            # x
            pl.BlockSpec((tk, latent), lambda i, k: (k, 0), **w1_kw),  # w1
            pl.BlockSpec((1, latent), lambda i, k: (0, 0), **inv),  # b1
            pl.BlockSpec((2, latent), lambda i, k: (0, 0), **inv),  # w2^T
            pl.BlockSpec((2, 1), lambda i, k: (0, 0), **inv),       # b2
        ]

    def run(single_buffer_invariants):
        return pl.pallas_call(
            kernel,
            out_shape=out_shape,
            grid=(nb, nk),
            in_specs=build_in_specs(single_buffer_invariants),
            out_specs=pl.BlockSpec((2, tb), lambda i, k: (0, i)),  # lane-dense
            scratch_shapes=scratch,
            compiler_params=compiler_params,
            cost_estimate=cost,
        )(x, w1c, b1c, w2t, b2c)

    try:
        # Single-buffer the grid-invariant operands (halves their VMEM).
        out = run(True)
    except Exception:
        # pl.Buffered(1) not accepted by this jax/Mosaic build -> default
        # double buffering (pure perf fallback; semantics identical).
        out = run(False)

    return out[0, :], out[1, :]


def init_params(key, n_pixels, latent_dim):
    """Deterministic init mimicking nn.Linear's uniform(-1/sqrt(fan_in), ...)."""
    k1, k2, k3, k4 = jax.random.split(key, 4)
    bound1 = 1.0 / jnp.sqrt(n_pixels)
    bound2 = 1.0 / jnp.sqrt(latent_dim)
    # stored as [in, out] (transpose of PyTorch's [out, in])
    w1 = jax.random.uniform(k1, (n_pixels, latent_dim), jnp.float32, -bound1, bound1)
    b1 = jax.random.uniform(k2, (latent_dim,), jnp.float32, -bound1, bound1)
    w2 = jax.random.uniform(k3, (latent_dim, 2), jnp.float32, -bound2, bound2)
    b2 = jax.random.uniform(k4, (2,), jnp.float32, -bound2, bound2)
    return w1, b1, w2, b2


def reference_forward(image, w1, b1, w2, b2):
    B = image.shape[0]
    x = image.reshape(B, -1).astype(jnp.float32)
    h = jnp.maximum(x @ w1 + b1, 0.0)
    out = h @ w2 + b2
    mean = out[:, 0]
    sd = jax.nn.softplus(out[:, 1]) + 1e-6
    return mean, sd


if __name__ == "__main__":
    key = jax.random.PRNGKey(0)
    k_img, k_par, k_img2, k_par3, k_img3 = jax.random.split(key, 5)

    # 1) Small config: slen=16 -> n_pixels=256, latent=32, batch=8.
    slen, latent_dim, batch = 16, 32, 8
    n_pixels = slen * slen
    image = jax.random.normal(k_img, (batch, slen, slen), jnp.float32)
    w1, b1, w2, b2 = init_params(k_par, n_pixels, latent_dim)

    mean, sd = jax.block_until_ready(mlp_encoder(image, w1, b1, w2, b2))
    ref_mean, ref_sd = reference_forward(image, w1, b1, w2, b2)
    assert mean.shape == (batch,) and sd.shape == (batch,)
    assert jnp.allclose(mean, ref_mean, atol=1e-4, rtol=1e-4)
    assert jnp.allclose(sd, ref_sd, atol=1e-4, rtol=1e-4)
    assert bool(jnp.all(sd > 0))

    # 2) Non-multiple, larger batch: ragged last batch block (no wrapper
    #    padding), multi-step "parallel" grid, lane-dense (2, tb) output path.
    batch2 = 300
    image2 = jax.random.normal(k_img2, (batch2, slen, slen), jnp.float32)
    mean2, sd2 = jax.block_until_ready(mlp_encoder(image2, w1, b1, w2, b2))
    ref_mean2, ref_sd2 = reference_forward(image2, w1, b1, w2, b2)
    assert mean2.shape == (batch2,) and sd2.shape == (batch2,)
    assert jnp.allclose(mean2, ref_mean2, atol=1e-4, rtol=1e-4)
    assert jnp.allclose(sd2, ref_sd2, atol=1e-4, rtol=1e-4)
    assert bool(jnp.all(sd2 > 0))

    # 3) Module defaults (slen=51 -> n_pixels=2601, latent=64) with a forced
    #    small K tile to exercise the K-tiled accumulator and ragged-K masking.
    slen3, latent3, batch3 = 51, 64, 64
    n_pix3 = slen3 * slen3
    image3 = jax.random.normal(k_img3, (batch3, slen3, slen3), jnp.float32)
    w1_3, b1_3, w2_3, b2_3 = init_params(k_par3, n_pix3, latent3)
    mean3, sd3 = jax.block_until_ready(
        mlp_encoder(image3, w1_3, b1_3, w2_3, b2_3, tk=512))
    ref_mean3, ref_sd3 = reference_forward(image3, w1_3, b1_3, w2_3, b2_3)
    assert mean3.shape == (batch3,) and sd3.shape == (batch3,)
    # Slightly looser tolerance: K-chunked accumulation order differs from the
    # single-dot f32 reference over 2601 terms.
    assert jnp.allclose(mean3, ref_mean3, atol=1e-3, rtol=1e-3)
    assert jnp.allclose(sd3, ref_sd3, atol=1e-3, rtol=1e-3)
    assert bool(jnp.all(sd3 > 0))

    print("KERNEL_OK")
</pallas_src>

<mosaic_0001>
module attributes {stable_mosaic.version = 11 : i64} {
  func.func @kernel(%arg0: i32, %arg1: i32, %arg2: memref<8x256xf32, #tpu.memory_space<vmem>>, %arg3: memref<256x32xf32, #tpu.memory_space<vmem>>, %arg4: memref<1x32xf32, #tpu.memory_space<vmem>>, %arg5: memref<2x32xf32, #tpu.memory_space<vmem>>, %arg6: memref<2x1xf32, #tpu.memory_space<vmem>>, %arg7: memref<2x8xf32, #tpu.memory_space<vmem>>, %arg8: memref<8x32xf32, #tpu.memory_space<vmem>>) attributes {dimension_semantics = [#tpu.dimension_semantics<parallel>, #tpu.dimension_semantics<arbitrary>], iteration_bounds = array<i64: 1, 1>, scalar_prefetch = 0 : i64, scratch_operands = 1 : i64, tpu.core_type = #tpu.core_type<tc>, window_params = [{transform_indices = @transform_0, window_bounds = array<i64: 8, 256>}, {pipeline_mode = #tpu.pipeline_mode<synchronous>, transform_indices = @transform_1, window_bounds = array<i64: 256, 32>}, {pipeline_mode = #tpu.pipeline_mode<synchronous>, transform_indices = @transform_2, window_bounds = array<i64: 1, 32>}, {pipeline_mode = #tpu.pipeline_mode<synchronous>, transform_indices = @transform_3, window_bounds = array<i64: 2, 32>}, {pipeline_mode = #tpu.pipeline_mode<synchronous>, transform_indices = @transform_4, window_bounds = array<i64: 2, 1>}, {transform_indices = @transform_5, window_bounds = array<i64: 2, 8>}]} {
    %c0_i32 = arith.constant 0 : i32
    %0 = arith.cmpi eq, %arg1, %c0_i32 : i32
    %1 = arith.extui %0 : i1 to i32
    %c0_i32_0 = arith.constant 0 : i32
    %2 = arith.cmpi ne, %1, %c0_i32_0 : i32
    scf.if %2 {
      %cst_10 = arith.constant 0.000000e+00 : f32
      %12 = vector.broadcast %cst_10 : f32 to vector<8x32xf32>
      %c0_11 = arith.constant 0 : index
      %c0_12 = arith.constant 0 : index
      %13 = vector.load %arg8[%c0_11, %c0_12] : memref<8x32xf32, #tpu.memory_space<vmem>>, vector<8x32xf32>
      tpu.vector_store %arg8[%c0_11, %c0_12], %12 {strides = array<i32>} : memref<8x32xf32, #tpu.memory_space<vmem>>, vector<8x32xf32>,
    } else {
    }
    %c0 = arith.constant 0 : index
    %c0_1 = arith.constant 0 : index
    %3 = vector.load %arg2[%c0, %c0_1] : memref<8x256xf32, #tpu.memory_space<vmem>>, vector<8x256xf32>
    %c0_2 = arith.constant 0 : index
    %c0_3 = arith.constant 0 : index
    %4 = vector.load %arg3[%c0_2, %c0_3] : memref<256x32xf32, #tpu.memory_space<vmem>>, vector<256x32xf32>
    %c0_4 = arith.constant 0 : index
    %c0_5 = arith.constant 0 : index
    %5 = vector.load %arg8[%c0_4, %c0_5] : memref<8x32xf32, #tpu.memory_space<vmem>>, vector<8x32xf32>
    %cst = arith.constant dense<0.000000e+00> : vector<8x32xf32>
    %6 = tpu.matmul %3, %4, %cst {dimension_numbers = #tpu.dot_dimension_numbers<[1], [0], [0], [1], [0, 0, 1, 1], [], []>} : vector<8x256xf32>, vector<256x32xf32>, vector<8x32xf32> -> vector<8x32xf32>
    %7 = arith.addf %5, %6 : vector<8x32xf32>
    %c0_6 = arith.constant 0 : index
    %c0_7 = arith.constant 0 : index
    %8 = vector.load %arg8[%c0_6, %c0_7] : memref<8x32xf32, #tpu.memory_space<vmem>>, vector<8x32xf32>
    tpu.vector_store %arg8[%c0_6, %c0_7], %7 {strides = array<i32>} : memref<8x32xf32, #tpu.memory_space<vmem>>, vector<8x32xf32>,
    %c0_i32_8 = arith.constant 0 : i32
    %9 = arith.cmpi eq, %arg1, %c0_i32_8 : i32
    %10 = arith.extui %9 : i1 to i32
    %c0_i32_9 = arith.constant 0 : i32
    %11 = arith.cmpi ne, %10, %c0_i32_9 : i32
    scf.if %11 {
      %c0_10 = arith.constant 0 : index
      %c0_11 = arith.constant 0 : index
      %12 = vector.load %arg8[%c0_10, %c0_11] : memref<8x32xf32, #tpu.memory_space<vmem>>, vector<8x32xf32>
      %c0_12 = arith.constant 0 : index
      %c0_13 = arith.constant 0 : index
      %13 = vector.load %arg4[%c0_12, %c0_13] : memref<1x32xf32, #tpu.memory_space<vmem>>, vector<1x32xf32>
      %14 = vector.broadcast %13 : vector<1x32xf32> to vector<8x32xf32>
      %15 = arith.addf %12, %14 : vector<8x32xf32>
      %cst_14 = arith.constant 0.000000e+00 : f32
      %16 = vector.broadcast %cst_14 : f32 to vector<8x32xf32>
      %17 = arith.maximumf %15, %16 : vector<8x32xf32>
      %c0_15 = arith.constant 0 : index
      %c0_16 = arith.constant 0 : index
      %18 = vector.load %arg5[%c0_15, %c0_16] : memref<2x32xf32, #tpu.memory_space<vmem>>, vector<2x32xf32>
      %cst_17 = arith.constant dense<0.000000e+00> : vector<2x8xf32>
      %19 = tpu.matmul %18, %17, %cst_17 {dimension_numbers = #tpu.dot_dimension_numbers<[1], [1], [0], [0], [0, 0, 1, 0], [], []>} : vector<2x32xf32>, vector<8x32xf32>, vector<2x8xf32> -> vector<2x8xf32>
      %c0_18 = arith.constant 0 : index
      %c0_19 = arith.constant 0 : index
      %20 = vector.load %arg6[%c0_18, %c0_19] : memref<2x1xf32, #tpu.memory_space<vmem>>, vector<2x1xf32>
      %21 = vector.broadcast %20 : vector<2x1xf32> to vector<2x8xf32>
      %22 = arith.addf %19, %21 : vector<2x8xf32>
      %23 = vector.extract_strided_slice %22 {offsets = [0, 0], sizes = [1, 8], strides = [1, 1]} : vector<2x8xf32> to vector<1x8xf32>
      %c0_20 = arith.constant 0 : index
      %c0_21 = arith.constant 0 : index
      %24 = vector.load %arg7[%c0_20, %c0_21] : memref<2x8xf32, #tpu.memory_space<vmem>>, vector<1x8xf32>
      tpu.vector_store %arg7[%c0_20, %c0_21], %23 {strides = array<i32>} : memref<2x8xf32, #tpu.memory_space<vmem>>, vector<1x8xf32>,
      %25 = vector.extract_strided_slice %22 {offsets = [1, 0], sizes = [1, 8], strides = [1, 1]} : vector<2x8xf32> to vector<1x8xf32>
      %cst_22 = arith.constant 0.000000e+00 : f32
      %26 = vector.broadcast %cst_22 : f32 to vector<1x8xf32>
      %27 = arith.maximumf %25, %26 : vector<1x8xf32>
      %28 = vector.broadcast %cst_22 : f32 to vector<1x8xf32>
      %29 = arith.subf %25, %28 : vector<1x8xf32>
      %30 = arith.cmpf one, %29, %29 : vector<1x8xf32>
      %31 = vector.broadcast %cst_22 : f32 to vector<1x8xf32>
      %32 = arith.addf %25, %31 : vector<1x8xf32>
      %33 = math.absf %29 : vector<1x8xf32>
      %cst_23 = arith.constant 0.000000e+00 : f32
      %34 = vector.broadcast %cst_23 : f32 to vector<1x8xf32>
      %35 = arith.subf %34, %33 : vector<1x8xf32>
      %36 = math.exp %35 : vector<1x8xf32>
      %37 = math.log1p %36 : vector<1x8xf32>
      %38 = arith.addf %27, %37 : vector<1x8xf32>
      %39 = arith.select %30, %32, %38 : vector<1x8xi1>, vector<1x8xf32>
      %cst_24 = arith.constant 9.99999997E-7 : f32
      %40 = vector.broadcast %cst_24 : f32 to vector<1x8xf32>
      %41 = arith.addf %39, %40 : vector<1x8xf32>
      %c1 = arith.constant 1 : index
      %c0_25 = arith.constant 0 : index
      %42 = vector.load %arg7[%c1, %c0_25] : memref<2x8xf32, #tpu.memory_space<vmem>>, vector<1x8xf32>
      tpu.vector_store %arg7[%c1, %c0_25], %41 {strides = array<i32>} : memref<2x8xf32, #tpu.memory_space<vmem>>, vector<1x8xf32>,
    } else {
    }
    return
  }
  func.func @transform_0(%arg0: i32, %arg1: i32) -> (i32, i32) {
    %c0_i32 = arith.constant 0 : i32
    return %arg0, %arg1 : i32, i32
  }
  func.func @transform_1(%arg0: i32, %arg1: i32) -> (i32, i32) {
    %c0_i32 = arith.constant 0 : i32
    %c0_i32_0 = arith.constant 0 : i32
    return %arg1, %c0_i32 : i32, i32
  }
  func.func @transform_2(%arg0: i32, %arg1: i32) -> (i32, i32) {
    %c0_i32 = arith.constant 0 : i32
    %c0_i32_0 = arith.constant 0 : i32
    %c0_i32_1 = arith.constant 0 : i32
    return %c0_i32, %c0_i32_0 : i32, i32
  }
  func.func @transform_3(%arg0: i32, %arg1: i32) -> (i32, i32) {
    %c0_i32 = arith.constant 0 : i32
    %c0_i32_0 = arith.constant 0 : i32
    %c0_i32_1 = arith.constant 0 : i32
    return %c0_i32, %c0_i32_0 : i32, i32
  }
  func.func @transform_4(%arg0: i32, %arg1: i32) -> (i32, i32) {
    %c0_i32 = arith.constant 0 : i32
    %c0_i32_0 = arith.constant 0 : i32
    %c0_i32_1 = arith.constant 0 : i32
    return %c0_i32, %c0_i32_0 : i32, i32
  }
  func.func @transform_5(%arg0: i32, %arg1: i32) -> (i32, i32) {
    %c0_i32 = arith.constant 0 : i32
    %c0_i32_0 = arith.constant 0 : i32
    return %c0_i32, %arg0 : i32, i32
  }
}

module attributes {stable_mosaic.version = 11 : i64} {
  func.func @kernel(%arg0: i32, %arg1: i32, %arg2: memref<8x256xf32, #tpu.memory_space<vmem>>, %arg3: memref<256x32xf32, #tpu.memory_space<vmem>>, %arg4: memref<1x32xf32, #tpu.memory_space<vmem>>, %arg5: memref<2x32xf32, #tpu.memory_space<vmem>>, %arg6: memref<2x1xf32, #tpu.memory_space<vmem>>, %arg7: memref<2x8xf32, #tpu.memory_space<vmem>>, %arg8: memref<8x32xf32, #tpu.memory_space<vmem>>) attributes {dimension_semantics = [#tpu.dimension_semantics<parallel>, #tpu.dimension_semantics<arbitrary>], iteration_bounds = array<i64: 1, 1>, scalar_prefetch = 0 : i64, scratch_operands = 1 : i64, tpu.core_type = #tpu.core_type<tc>, window_params = [{transform_indices = @transform_0, window_bounds = array<i64: 8, 256>}, {transform_indices = @transform_1, window_bounds = array<i64: 256, 32>}, {pipeline_mode = #tpu.pipeline_mode<synchronous>, transform_indices = @transform_2, window_bounds = array<i64: 1, 32>}, {pipeline_mode = #tpu.pipeline_mode<synchronous>, transform_indices = @transform_3, window_bounds = array<i64: 2, 32>}, {pipeline_mode = #tpu.pipeline_mode<synchronous>, transform_indices = @transform_4, window_bounds = array<i64: 2, 1>}, {transform_indices = @transform_5, window_bounds = array<i64: 2, 8>}]} {
    %c0_i32 = arith.constant 0 : i32
    %0 = arith.cmpi eq, %arg1, %c0_i32 : i32
    %1 = arith.extui %0 : i1 to i32
    %c0_i32_0 = arith.constant 0 : i32
    %2 = arith.cmpi ne, %1, %c0_i32_0 : i32
    scf.if %2 {
      %cst_10 = arith.constant 0.000000e+00 : f32
      %12 = vector.broadcast %cst_10 : f32 to vector<8x32xf32>
      %c0_11 = arith.constant 0 : index
      %c0_12 = arith.constant 0 : index
      %13 = vector.load %arg8[%c0_11, %c0_12] : memref<8x32xf32, #tpu.memory_space<vmem>>, vector<8x32xf32>
      tpu.vector_store %arg8[%c0_11, %c0_12], %12 {strides = array<i32>} : memref<8x32xf32, #tpu.memory_space<vmem>>, vector<8x32xf32>,
    } else {
    }
    %c0 = arith.constant 0 : index
    %c0_1 = arith.constant 0 : index
    %3 = vector.load %arg2[%c0, %c0_1] : memref<8x256xf32, #tpu.memory_space<vmem>>, vector<8x256xf32>
    %c0_2 = arith.constant 0 : index
    %c0_3 = arith.constant 0 : index
    %4 = vector.load %arg3[%c0_2, %c0_3] : memref<256x32xf32, #tpu.memory_space<vmem>>, vector<256x32xf32>
    %c0_4 = arith.constant 0 : index
    %c0_5 = arith.constant 0 : index
    %5 = vector.load %arg8[%c0_4, %c0_5] : memref<8x32xf32, #tpu.memory_space<vmem>>, vector<8x32xf32>
    %cst = arith.constant dense<0.000000e+00> : vector<8x32xf32>
    %6 = tpu.matmul %3, %4, %cst {dimension_numbers = #tpu.dot_dimension_numbers<[1], [0], [0], [1], [0, 0, 1, 1], [], []>} : vector<8x256xf32>, vector<256x32xf32>, vector<8x32xf32> -> vector<8x32xf32>
    %7 = arith.addf %5, %6 : vector<8x32xf32>
    %c0_6 = arith.constant 0 : index
    %c0_7 = arith.constant 0 : index
    %8 = vector.load %arg8[%c0_6, %c0_7] : memref<8x32xf32, #tpu.memory_space<vmem>>, vector<8x32xf32>
    tpu.vector_store %arg8[%c0_6, %c0_7], %7 {strides = array<i32>} : memref<8x32xf32, #tpu.memory_space<vmem>>, vector<8x32xf32>,
    %c0_i32_8 = arith.constant 0 : i32
    %9 = arith.cmpi eq, %arg1, %c0_i32_8 : i32
    %10 = arith.extui %9 : i1 to i32
    %c0_i32_9 = arith.constant 0 : i32
    %11 = arith.cmpi ne, %10, %c0_i32_9 : i32
    scf.if %11 {
      %c0_10 = arith.constant 0 : index
      %c0_11 = arith.constant 0 : index
      %12 = vector.load %arg8[%c0_10, %c0_11] : memref<8x32xf32, #tpu.memory_space<vmem>>, vector<8x32xf32>
      %c0_12 = arith.constant 0 : index
      %c0_13 = arith.constant 0 : index
      %13 = vector.load %arg4[%c0_12, %c0_13] : memref<1x32xf32, #tpu.memory_space<vmem>>, vector<1x32xf32>
      %14 = vector.broadcast %13 : vector<1x32xf32> to vector<8x32xf32>
      %15 = arith.addf %12, %14 : vector<8x32xf32>
      %cst_14 = arith.constant 0.000000e+00 : f32
      %16 = vector.broadcast %cst_14 : f32 to vector<8x32xf32>
      %17 = arith.maximumf %15, %16 : vector<8x32xf32>
      %c0_15 = arith.constant 0 : index
      %c0_16 = arith.constant 0 : index
      %18 = vector.load %arg5[%c0_15, %c0_16] : memref<2x32xf32, #tpu.memory_space<vmem>>, vector<2x32xf32>
      %cst_17 = arith.constant dense<0.000000e+00> : vector<2x8xf32>
      %19 = tpu.matmul %18, %17, %cst_17 {dimension_numbers = #tpu.dot_dimension_numbers<[1], [1], [0], [0], [0, 0, 1, 0], [], []>} : vector<2x32xf32>, vector<8x32xf32>, vector<2x8xf32> -> vector<2x8xf32>
      %c0_18 = arith.constant 0 : index
      %c0_19 = arith.constant 0 : index
      %20 = vector.load %arg6[%c0_18, %c0_19] : memref<2x1xf32, #tpu.memory_space<vmem>>, vector<2x1xf32>
      %21 = vector.broadcast %20 : vector<2x1xf32> to vector<2x8xf32>
      %22 = arith.addf %19, %21 : vector<2x8xf32>
      %23 = vector.extract_strided_slice %22 {offsets = [0, 0], sizes = [1, 8], strides = [1, 1]} : vector<2x8xf32> to vector<1x8xf32>
      %c0_20 = arith.constant 0 : index
      %c0_21 = arith.constant 0 : index
      %24 = vector.load %arg7[%c0_20, %c0_21] : memref<2x8xf32, #tpu.memory_space<vmem>>, vector<1x8xf32>
      tpu.vector_store %arg7[%c0_20, %c0_21], %23 {strides = array<i32>} : memref<2x8xf32, #tpu.memory_space<vmem>>, vector<1x8xf32>,
      %25 = vector.extract_strided_slice %22 {offsets = [1, 0], sizes = [1, 8], strides = [1, 1]} : vector<2x8xf32> to vector<1x8xf32>
      %cst_22 = arith.constant 0.000000e+00 : f32
      %26 = vector.broadcast %cst_22 : f32 to vector<1x8xf32>
      %27 = arith.maximumf %25, %26 : vector<1x8xf32>
      %28 = vector.broadcast %cst_22 : f32 to vector<1x8xf32>
      %29 = arith.subf %25, %28 : vector<1x8xf32>
      %30 = arith.cmpf one, %29, %29 : vector<1x8xf32>
      %31 = vector.broadcast %cst_22 : f32 to vector<1x8xf32>
      %32 = arith.addf %25, %31 : vector<1x8xf32>
      %33 = math.absf %29 : vector<1x8xf32>
      %cst_23 = arith.constant 0.000000e+00 : f32
      %34 = vector.broadcast %cst_23 : f32 to vector<1x8xf32>
      %35 = arith.subf %34, %33 : vector<1x8xf32>
      %36 = math.exp %35 : vector<1x8xf32>
      %37 = math.log1p %36 : vector<1x8xf32>
      %38 = arith.addf %27, %37 : vector<1x8xf32>
      %39 = arith.select %30, %32, %38 : vector<1x8xi1>, vector<1x8xf32>
      %cst_24 = arith.constant 9.99999997E-7 : f32
      %40 = vector.broadcast %cst_24 : f32 to vector<1x8xf32>
      %41 = arith.addf %39, %40 : vector<1x8xf32>
      %c1 = arith.constant 1 : index
      %c0_25 = arith.constant 0 : index
      %42 = vector.load %arg7[%c1, %c0_25] : memref<2x8xf32, #tpu.memory_space<vmem>>, vector<1x8xf32>
      tpu.vector_store %arg7[%c1, %c0_25], %41 {strides = array<i32>} : memref<2x8xf32, #tpu.memory_space<vmem>>, vector<1x8xf32>,
    } else {
    }
    return
  }
  func.func @transform_0(%arg0: i32, %arg1: i32) -> (i32, i32) {
    %c0_i32 = arith.constant 0 : i32
    return %arg0, %arg1 : i32, i32
  }
  func.func @transform_1(%arg0: i32, %arg1: i32) -> (i32, i32) {
    %c0_i32 = arith.constant 0 : i32
    %c0_i32_0 = arith.constant 0 : i32
    return %arg1, %c0_i32 : i32, i32
  }
  func.func @transform_2(%arg0: i32, %arg1: i32) -> (i32, i32) {
    %c0_i32 = arith.constant 0 : i32
    %c0_i32_0 = arith.constant 0 : i32
    %c0_i32_1 = arith.constant 0 : i32
    return %c0_i32, %c0_i32_0 : i32, i32
  }
  func.func @transform_3(%arg0: i32, %arg1: i32) -> (i32, i32) {
    %c0_i32 = arith.constant 0 : i32
    %c0_i32_0 = arith.constant 0 : i32
    %c0_i32_1 = arith.constant 0 : i32
    return %c0_i32, %c0_i32_0 : i32, i32
  }
  func.func @transform_4(%arg0: i32, %arg1: i32) -> (i32, i32) {
    %c0_i32 = arith.constant 0 : i32
    %c0_i32_0 = arith.constant 0 : i32
    %c0_i32_1 = arith.constant 0 : i32
    return %c0_i32, %c0_i32_0 : i32, i32
  }
  func.func @transform_5(%arg0: i32, %arg1: i32) -> (i32, i32) {
    %c0_i32 = arith.constant 0 : i32
    %c0_i32_0 = arith.constant 0 : i32
    return %c0_i32, %arg0 : i32, i32
  }
}

</mosaic_0001>

<bundles_post_ra>
// kernel: tpu_custom_call.1
= control target key start
LH: loop header
LB: loop body
LE: loop exit
PB: predicated region body
PF: predicated region fallthrough
CT: control target
= control target key end

     0   :  { %s496_s0 = inlined_call_operand.vmem [shape: f32[8,256], index: 0, kind: input, shape index: {}]   ;;  %s497_s1 = inlined_call_operand.vmem [shape: f32[256,32], index: 1, kind: input, shape index: {}]   ;;  %s498_s2 = inlined_call_operand.vmem [shape: f32[1,32], index: 2, kind: input, shape index: {}]   ;;  %s499_s3 = inlined_call_operand.vmem [shape: f32[2,32], index: 3, kind: input, shape index: {}]   ;;  %s500_s4 = inlined_call_operand.vmem [shape: f32[2,1], index: 4, kind: input, shape index: {}]   ;;  %s501_s5 = inlined_call_operand.hbm [shape: f32[2,8], index: 5, kind: output, shape index: {}]  }
   0x1   :  { %v60_v0 = vld [vmem:[%s497_s1 + $0xf8] sm:$0xff]  ;;  %v59_v2 = vld [vmem:[%s497_s1 + $0xf0] sm:$0xff]  ;;  %v58_v4 = vld [vmem:[%s497_s1 + $0xe8] sm:$0xff] }
   0x2   :  { %v44_v1 = vld [vmem:[%s497_s1 + $0x78] sm:$0xff]  ;;  %271 = vmatprep.subr.mxu0 %v60_v0  ;;  %v43_v3 = vld [vmem:[%s497_s1 + $0x70] sm:$0xff]  ;;  %v42_v5 = vld [vmem:[%s497_s1 + $0x68] sm:$0xff] }
   0x3   :  { %272 = vmatpush3.msra.mxu0 %v44_v1  ;;  %v57_v6 = vld [vmem:[%s497_s1 + $0xe0] sm:$0xff]  ;;  %v56_v8 = vld [vmem:[%s497_s1 + $0xd8] sm:$0xff]  ;;  %v55_v10 = vld [vmem:[%s497_s1 + $0xd0] sm:$0xff] }
   0x4   :  { %273 = vmatprep.subr.mxu0 %v59_v2  ;;  %v41_v7 = vld [vmem:[%s497_s1 + $0x60] sm:$0xff]  ;;  %v40_v9 = vld [vmem:[%s497_s1 + $0x58] sm:$0xff]  ;;  %v39_v11 = vld [vmem:[%s497_s1 + $0x50] sm:$0xff] }
   0x5   :  { %274 = vmatpush3.msra.mxu0 %v43_v3  ;;  %v54_v12 = vld [vmem:[%s497_s1 + $0xc8] sm:$0xff] }
   0x6   :  { %275 = vmatprep.subr.mxu0 %v58_v4  ;;  %v28_v13 = vld [vmem:[%s496_s0 + $0x8] sm:$0xff] }
   0x7   :  { %276 = vmatpush3.msra.mxu0 %v42_v5  ;;  %v38_v14 = vld [vmem:[%s497_s1 + $0x48] sm:$0xff]  ;;  %126 = vmatprep.mubr.f32.mxu0 %v28_v13 }
   0x8   :  { %277 = vmatprep.subr.mxu0 %v57_v6 }
   0x9   :  { %278 = vmatpush3.msra.mxu0 %v41_v7 }
   0xa   :  { %279 = vmatprep.subr.mxu0 %v56_v8 }
   0xb   :  { %280 = vmatpush3.msra.mxu0 %v40_v9 }
   0xc   :  { %281 = vmatprep.subr.mxu0 %v55_v10 }
   0xd   :  { %10 = vsyncpa [#allocation4], 0  ;;  %282 = vmatpush3.msra.mxu0 %v39_v11  ;;  %v53_v15 = vld [vmem:[%s497_s1 + $0xc0] sm:$0xff]  ;;  %v52_v17 = vld [vmem:[%s497_s1 + $0xb8] sm:$0xff]  ;;  %vm25_vm0 = vcmask 261120   ;;  %v344_v34 = vmov 0.0  }
   0xe   :  { %283 = vmatprep.subr.mxu0 %v54_v12  ;;  %v37_v16 = vld [vmem:[%s497_s1 + $0x40] sm:$0xff]  ;;  %v36_v18 = vld [vmem:[%s497_s1 + $0x38] sm:$0xff]  ;;  %v51_v19 = vld [vmem:[%s497_s1 + $0xb0] sm:$0xff]  ;;  %26 = vst.msk [vmem:[#allocation2] sm:$0xff] %vm25_vm0, %v344_v34  ;;  %308 = vmatprep.subr.mxu1 %v344_v34  ;;  %vm345_vm1 = vmmov 0   ;;  %v346_v36 = vmov 0  }
   0xf   :  { %284 = vmatpush3.msra.mxu0 %v38_v14  ;;  %v35_v20 = vld [vmem:[%s497_s1 + $0x30] sm:$0xff]  ;;  %v50_v21 = vld [vmem:[%s497_s1 + $0xa8] sm:$0xff]  ;;  %v49_v23 = vld [vmem:[%s497_s1 + $0xa0] sm:$0xff]  ;;  %310 = vmatprep.mubr.msk.f32.mxu1 %vm345_vm1, %v344_v34  ;;  %vm231_vm2 = vcmask 57344   ;;  %vm252_vm5 = vcmask 58369  }
  0x10   :  { %285 = vmatprep.subr.mxu0 %v53_v15  ;;  %v34_v22 = vld [vmem:[%s497_s1 + $0x28] sm:$0xff]  ;;  %v33_v24 = vld [vmem:[%s497_s1 + $0x20] sm:$0xff]  ;;  %v48_v25 = vld [vmem:[%s497_s1 + $0x98] sm:$0xff]  ;;  %317 = vset.pattern.permute.xlu0 %v346_v36 }
  0x11   :  { %286 = vmatpush3.msra.mxu0 %v37_v16  ;;  %v32_v26 = vld [vmem:[%s497_s1 + $0x18] sm:$0xff]  ;;  %v47_v27 = vld [vmem:[%s497_s1 + $0x90] sm:$0xff]  ;;  %v46_v29 = vld [vmem:[%s497_s1 + $0x88] sm:$0xff] }
  0x12   :  { %287 = vmatprep.subr.mxu0 %v52_v17  ;;  %v31_v28 = vld [vmem:[%s497_s1 + $0x10] sm:$0xff]  ;;  %v30_v30 = vld [vmem:[%s497_s1 + $0x8] sm:$0xff]  ;;  %v45_v31 = vld [vmem:[%s497_s1 + $0x80] sm:$0xff] }
  0x13   :  { %288 = vmatpush3.msra.mxu0 %v36_v18  ;;  %v29_v32 = vld [vmem:[%s497_s1] sm:$0xff] }
  0x14   :  { %289 = vmatprep.subr.mxu0 %v51_v19  ;;  %v27_v33 = vld [vmem:[%s496_s0] sm:$0xff] }
  0x15   :  { %290 = vmatpush3.msra.mxu0 %v35_v20  ;;  %v149_v35 = vld [vmem:[%s500_s4] sm:$0x3] }
  0x16   :  { %291 = vmatprep.subr.mxu0 %v50_v21  ;;  %152 = vperm.xlu0 %317, %v149_v35   ;;  %v61_v39 = vld [vmem:[#allocation2] sm:$0xff] }
  0x17   :  { %292 = vmatpush3.msra.mxu0 %v34_v22  ;;  %v268_v42 = vld [vmem:[%s498_s2] ss:$0 sm:$0xff]  ;;  %s347_s2 = smov [#allocation3]  }
  0x18   :  { %293 = vmatprep.subr.mxu0 %v49_v23  ;;  %v148_v46 = vld [vmem:[%s499_s3] sm:$0x3]  ;;  %s260_s3 = sshll.u32 %s347_s2, 4  ;;  %s261_s3 = int_to_ptr.vmem [resolvable:$true] %s260_s3 }
  0x19   :  { %294 = vmatpush3.msra.mxu0 %v33_v24  ;;  %s322_s14 = scalar_lea.vmem %s261_s3, 32  ;;  %p327_p1 = scmp.lt.s32.totalorder %s261_s3, %s261_s3 }
  0x1a   :  { %295 = vmatprep.subr.mxu0 %v48_v25  ;;  %p323_p0 = scmp.ne.s32.totalorder %s261_s3, %s322_s14  ;;  %p328_p2 = scmp.lt.s32.totalorder %s322_s14, %s322_s14 }
  0x1b   :  { %296 = vmatpush3.msra.mxu0 %v32_v26 }
  0x1c   :  { %297 = vmatprep.subr.mxu0 %v47_v27  ;;  %p329_p3 = por %p328_p2, %p327_p1 }
  0x1d   :  { %298 = vmatpush3.msra.mxu0 %v31_v28 }
  0x1e   :  { %299 = vmatprep.subr.mxu0 %v46_v29  ;;  %p330_p4 = pnand %p329_p3, %p323_p0 }
  0x1f   :  { %300 = vmatpush3.msra.mxu0 %v30_v30 }
  0x20   :  { %301 = vmatprep.subr.mxu0 %v45_v31 }
  0x21   :  { %302 = vmatpush3.msra.mxu0 %v29_v32 }
  0x22   :  { %127 = vmatmul.mubr.f32.vlgmr.msra.gmra.mxu0 %v27_v33 }
  0x91   :  { %v153_v47 = vpop.permute.xlu0 %152 }
  0xe2   :  { %v303_v37 = vpop.f32.mrf.mxu0 }
  0xe4   :  { %v304_v38 = vpop.f32.mrf.mxu0 }
  0xe5   :  { %v305_v40 = vadd.f32 %v304_v38, %v303_v37 }
  0xe7   :  { %v132_v41 = vadd.f32 %v305_v40, %v61_v39 }
  0xe9   :  { %134 = vst.msk [vmem:[#allocation2] sm:$0xff] %vm25_vm0, %v132_v41 }
  0xf0   :  { %v138_v43 = vld [vmem:[#allocation2] sm:$0xff] }
  0xf1   :  { %v146_v44 = vadd.f32 %v268_v42, %v138_v43 }
  0xf3   :  { %v147_v45 = vmax.f32 %v146_v44, 0.0 }
  0xf5   :  { %309 = vmatpush3.xpose.msk.msra.mxu1 %vm25_vm0, %v147_v45 }
  0xf8   :  { %311 = vmatmul.mubr.msk.f32.vlgmr.msra.gmra.mxu1 %vm25_vm0, %v148_v46 }
 0x1b8   :  { %v227_v48 = vpop.f32.mrf.mxu1 }
 0x1b9   :  { %v228_v49 = vadd.f32 %v227_v48, %v153_v47 }
 0x1ba   :  { %v312_v50 = vpop.f32.mrf.mxu1 }
 0x1bb   :  { %v236_v51 = vand.u32 2147483647, %v228_v49  ;;  %232 = vst.msk [vmem:[#allocation3] sm:$0x1] %vm231_vm2, %v228_v49  ;;  %v233_v62 = vmax.f32 %v228_v49, 0.0  ;;  %vm234_vm4 = vcmp.ne.f32.partialorder %v228_v49, %v228_v49 }
 0x1bd   :  { %v237_v52 = vsub.f32 0.0, %v236_v51 }
 0x1bf   :  { %v238_v53 = vmul.f32 1.442695, %v237_v52 }
 0x1c1   :  { %318 = vpow2.f32 %v238_v53 }
 0x1ce   :  { %v319_v54 = vpop.eup %318 }
 0x1cf   :  { %v240_v55 = vadd.f32 1.0, %v319_v54  ;;  %v243_v56 = vmul.f32 -0.5, %v319_v54  ;;  %v246_v58 = vand.u32 2147483647, %v319_v54 }
 0x1d1   :  { %320 = vlog2.f32 %v240_v55  ;;  %v244_v57 = vadd.f32 1.0, %v243_v56  ;;  %vm247_vm3 = vcmp.lt.f32.partialorder %v246_v58, 0.0004427343 }
 0x1d3   :  { %v245_v61 = vmul.f32 %v319_v54, %v244_v57 }
 0x1de   :  { %v321_v59 = vpop.eup %320 }
 0x1df   :  { %v242_v60 = vmul.f32 0.6931472, %v321_v59 }
 0x1e1   :  { %v248_v63 = vsel %vm247_vm3, %v245_v61, %v242_v60 }
 0x1e2   :  { %v249_v0 = vadd.f32 %v248_v63, %v233_v62 }
 0x1e4   :  { %v250_v1 = vsel %vm234_vm4, %v228_v49, %v249_v0 }
 0x1e5   :  { %v251_v2 = vadd.f32 1e-06, %v250_v1 }
 0x1e7   :  { %253 = vst.msk [vmem:[#allocation3] sm:$0x2] %vm252_vm5, %v251_v2 }
 0x1e8   :  { %333 = shalt.err (!%p330_p4)
}
 0x1e9   :  { %263 = dma.vmem_to_hbm [thread:$0]  %s261_s3, 32, %s501_s5, [#allocation4]  }
 0x1ea   :  { %342 = dma.done.wait [#allocation4], 32  }
 0x1eb   :  { %343 = vsyncadd [#allocation4], 4294967264 }
 0x1ec   :  { %267 = vsyncpa [#allocation4], 1 }

// kernel: tpu_custom_call.1
= control target key start
LH: loop header
LB: loop body
LE: loop exit
PB: predicated region body
PF: predicated region fallthrough
CT: control target
= control target key end

     0   :  { %s496_s0 = inlined_call_operand.vmem [shape: f32[8,256], index: 0, kind: input, shape index: {}]   ;;  %s497_s1 = inlined_call_operand.vmem [shape: f32[256,32], index: 1, kind: input, shape index: {}]   ;;  %s498_s2 = inlined_call_operand.vmem [shape: f32[1,32], index: 2, kind: input, shape index: {}]   ;;  %s499_s3 = inlined_call_operand.vmem [shape: f32[2,32], index: 3, kind: input, shape index: {}]   ;;  %s500_s4 = inlined_call_operand.vmem [shape: f32[2,1], index: 4, kind: input, shape index: {}]   ;;  %s501_s5 = inlined_call_operand.hbm [shape: f32[2,8], index: 5, kind: output, shape index: {}]  }
   0x1   :  { %v60_v0 = vld [vmem:[%s497_s1 + $0xf8] sm:$0xff]  ;;  %v59_v2 = vld [vmem:[%s497_s1 + $0xf0] sm:$0xff]  ;;  %v58_v4 = vld [vmem:[%s497_s1 + $0xe8] sm:$0xff] }
   0x2   :  { %v44_v1 = vld [vmem:[%s497_s1 + $0x78] sm:$0xff]  ;;  %271 = vmatprep.subr.mxu0 %v60_v0  ;;  %v43_v3 = vld [vmem:[%s497_s1 + $0x70] sm:$0xff]  ;;  %v42_v5 = vld [vmem:[%s497_s1 + $0x68] sm:$0xff] }
   0x3   :  { %272 = vmatpush3.msra.mxu0 %v44_v1  ;;  %v57_v6 = vld [vmem:[%s497_s1 + $0xe0] sm:$0xff]  ;;  %v56_v8 = vld [vmem:[%s497_s1 + $0xd8] sm:$0xff]  ;;  %v55_v10 = vld [vmem:[%s497_s1 + $0xd0] sm:$0xff] }
   0x4   :  { %273 = vmatprep.subr.mxu0 %v59_v2  ;;  %v41_v7 = vld [vmem:[%s497_s1 + $0x60] sm:$0xff]  ;;  %v40_v9 = vld [vmem:[%s497_s1 + $0x58] sm:$0xff]  ;;  %v39_v11 = vld [vmem:[%s497_s1 + $0x50] sm:$0xff] }
   0x5   :  { %274 = vmatpush3.msra.mxu0 %v43_v3  ;;  %v54_v12 = vld [vmem:[%s497_s1 + $0xc8] sm:$0xff] }
   0x6   :  { %275 = vmatprep.subr.mxu0 %v58_v4  ;;  %v28_v13 = vld [vmem:[%s496_s0 + $0x8] sm:$0xff] }
   0x7   :  { %276 = vmatpush3.msra.mxu0 %v42_v5  ;;  %v38_v14 = vld [vmem:[%s497_s1 + $0x48] sm:$0xff]  ;;  %126 = vmatprep.mubr.f32.mxu0 %v28_v13 }
   0x8   :  { %277 = vmatprep.subr.mxu0 %v57_v6 }
   0x9   :  { %278 = vmatpush3.msra.mxu0 %v41_v7 }
   0xa   :  { %279 = vmatprep.subr.mxu0 %v56_v8 }
   0xb   :  { %280 = vmatpush3.msra.mxu0 %v40_v9 }
   0xc   :  { %281 = vmatprep.subr.mxu0 %v55_v10 }
   0xd   :  { %10 = vsyncpa [#allocation4], 0  ;;  %282 = vmatpush3.msra.mxu0 %v39_v11  ;;  %v53_v15 = vld [vmem:[%s497_s1 + $0xc0] sm:$0xff]  ;;  %v52_v17 = vld [vmem:[%s497_s1 + $0xb8] sm:$0xff]  ;;  %vm25_vm0 = vcmask 261120   ;;  %v344_v34 = vmov 0.0  }
   0xe   :  { %283 = vmatprep.subr.mxu0 %v54_v12  ;;  %v37_v16 = vld [vmem:[%s497_s1 + $0x40] sm:$0xff]  ;;  %v36_v18 = vld [vmem:[%s497_s1 + $0x38] sm:$0xff]  ;;  %v51_v19 = vld [vmem:[%s497_s1 + $0xb0] sm:$0xff]  ;;  %26 = vst.msk [vmem:[#allocation2] sm:$0xff] %vm25_vm0, %v344_v34  ;;  %308 = vmatprep.subr.mxu1 %v344_v34  ;;  %vm345_vm1 = vmmov 0   ;;  %v346_v36 = vmov 0  }
   0xf   :  { %284 = vmatpush3.msra.mxu0 %v38_v14  ;;  %v35_v20 = vld [vmem:[%s497_s1 + $0x30] sm:$0xff]  ;;  %v50_v21 = vld [vmem:[%s497_s1 + $0xa8] sm:$0xff]  ;;  %v49_v23 = vld [vmem:[%s497_s1 + $0xa0] sm:$0xff]  ;;  %310 = vmatprep.mubr.msk.f32.mxu1 %vm345_vm1, %v344_v34  ;;  %vm231_vm2 = vcmask 57344   ;;  %vm252_vm5 = vcmask 58369  }
  0x10   :  { %285 = vmatprep.subr.mxu0 %v53_v15  ;;  %v34_v22 = vld [vmem:[%s497_s1 + $0x28] sm:$0xff]  ;;  %v33_v24 = vld [vmem:[%s497_s1 + $0x20] sm:$0xff]  ;;  %v48_v25 = vld [vmem:[%s497_s1 + $0x98] sm:$0xff]  ;;  %317 = vset.pattern.permute.xlu0 %v346_v36 }
  0x11   :  { %286 = vmatpush3.msra.mxu0 %v37_v16  ;;  %v32_v26 = vld [vmem:[%s497_s1 + $0x18] sm:$0xff]  ;;  %v47_v27 = vld [vmem:[%s497_s1 + $0x90] sm:$0xff]  ;;  %v46_v29 = vld [vmem:[%s497_s1 + $0x88] sm:$0xff] }
  0x12   :  { %287 = vmatprep.subr.mxu0 %v52_v17  ;;  %v31_v28 = vld [vmem:[%s497_s1 + $0x10] sm:$0xff]  ;;  %v30_v30 = vld [vmem:[%s497_s1 + $0x8] sm:$0xff]  ;;  %v45_v31 = vld [vmem:[%s497_s1 + $0x80] sm:$0xff] }
  0x13   :  { %288 = vmatpush3.msra.mxu0 %v36_v18  ;;  %v29_v32 = vld [vmem:[%s497_s1] sm:$0xff] }
  0x14   :  { %289 = vmatprep.subr.mxu0 %v51_v19  ;;  %v27_v33 = vld [vmem:[%s496_s0] sm:$0xff] }
  0x15   :  { %290 = vmatpush3.msra.mxu0 %v35_v20  ;;  %v149_v35 = vld [vmem:[%s500_s4] sm:$0x3] }
  0x16   :  { %291 = vmatprep.subr.mxu0 %v50_v21  ;;  %152 = vperm.xlu0 %317, %v149_v35   ;;  %v61_v39 = vld [vmem:[#allocation2] sm:$0xff] }
  0x17   :  { %292 = vmatpush3.msra.mxu0 %v34_v22  ;;  %v268_v42 = vld [vmem:[%s498_s2] ss:$0 sm:$0xff]  ;;  %s347_s2 = smov [#allocation3]  }
  0x18   :  { %293 = vmatprep.subr.mxu0 %v49_v23  ;;  %v148_v46 = vld [vmem:[%s499_s3] sm:$0x3]  ;;  %s260_s3 = sshll.u32 %s347_s2, 4  ;;  %s261_s3 = int_to_ptr.vmem [resolvable:$true] %s260_s3 }
  0x19   :  { %294 = vmatpush3.msra.mxu0 %v33_v24  ;;  %s322_s14 = scalar_lea.vmem %s261_s3, 32  ;;  %p327_p1 = scmp.lt.s32.totalorder %s261_s3, %s261_s3 }
  0x1a   :  { %295 = vmatprep.subr.mxu0 %v48_v25  ;;  %p323_p0 = scmp.ne.s32.totalorder %s261_s3, %s322_s14  ;;  %p328_p2 = scmp.lt.s32.totalorder %s322_s14, %s322_s14 }
  0x1b   :  { %296 = vmatpush3.msra.mxu0 %v32_v26 }
  0x1c   :  { %297 = vmatprep.subr.mxu0 %v47_v27  ;;  %p329_p3 = por %p328_p2, %p327_p1 }
  0x1d   :  { %298 = vmatpush3.msra.mxu0 %v31_v28 }
  0x1e   :  { %299 = vmatprep.subr.mxu0 %v46_v29  ;;  %p330_p4 = pnand %p329_p3, %p323_p0 }
  0x1f   :  { %300 = vmatpush3.msra.mxu0 %v30_v30 }
  0x20   :  { %301 = vmatprep.subr.mxu0 %v45_v31 }
  0x21   :  { %302 = vmatpush3.msra.mxu0 %v29_v32 }
  0x22   :  { %127 = vmatmul.mubr.f32.vlgmr.msra.gmra.mxu0 %v27_v33 }
  0x91   :  { %v153_v47 = vpop.permute.xlu0 %152 }
  0xe2   :  { %v303_v37 = vpop.f32.mrf.mxu0 }
  0xe4   :  { %v304_v38 = vpop.f32.mrf.mxu0 }
  0xe5   :  { %v305_v40 = vadd.f32 %v304_v38, %v303_v37 }
  0xe7   :  { %v132_v41 = vadd.f32 %v305_v40, %v61_v39 }
  0xe9   :  { %134 = vst.msk [vmem:[#allocation2] sm:$0xff] %vm25_vm0, %v132_v41 }
  0xf0   :  { %v138_v43 = vld [vmem:[#allocation2] sm:$0xff] }
  0xf1   :  { %v146_v44 = vadd.f32 %v268_v42, %v138_v43 }
  0xf3   :  { %v147_v45 = vmax.f32 %v146_v44, 0.0 }
  0xf5   :  { %309 = vmatpush3.xpose.msk.msra.mxu1 %vm25_vm0, %v147_v45 }
  0xf8   :  { %311 = vmatmul.mubr.msk.f32.vlgmr.msra.gmra.mxu1 %vm25_vm0, %v148_v46 }
 0x1b8   :  { %v227_v48 = vpop.f32.mrf.mxu1 }
 0x1b9   :  { %v228_v49 = vadd.f32 %v227_v48, %v153_v47 }
 0x1ba   :  { %v312_v50 = vpop.f32.mrf.mxu1 }
 0x1bb   :  { %v236_v51 = vand.u32 2147483647, %v228_v49  ;;  %232 = vst.msk [vmem:[#allocation3] sm:$0x1] %vm231_vm2, %v228_v49  ;;  %v233_v62 = vmax.f32 %v228_v49, 0.0  ;;  %vm234_vm4 = vcmp.ne.f32.partialorder %v228_v49, %v228_v49 }
 0x1bd   :  { %v237_v52 = vsub.f32 0.0, %v236_v51 }
 0x1bf   :  { %v238_v53 = vmul.f32 1.442695, %v237_v52 }
 0x1c1   :  { %318 = vpow2.f32 %v238_v53 }
 0x1ce   :  { %v319_v54 = vpop.eup %318 }
 0x1cf   :  { %v240_v55 = vadd.f32 1.0, %v319_v54  ;;  %v243_v56 = vmul.f32 -0.5, %v319_v54  ;;  %v246_v58 = vand.u32 2147483647, %v319_v54 }
 0x1d1   :  { %320 = vlog2.f32 %v240_v55  ;;  %v244_v57 = vadd.f32 1.0, %v243_v56  ;;  %vm247_vm3 = vcmp.lt.f32.partialorder %v246_v58, 0.0004427343 }
 0x1d3   :  { %v245_v61 = vmul.f32 %v319_v54, %v244_v57 }
 0x1de   :  { %v321_v59 = vpop.eup %320 }
 0x1df   :  { %v242_v60 = vmul.f32 0.6931472, %v321_v59 }
 0x1e1   :  { %v248_v63 = vsel %vm247_vm3, %v245_v61, %v242_v60 }
 0x1e2   :  { %v249_v0 = vadd.f32 %v248_v63, %v233_v62 }
 0x1e4   :  { %v250_v1 = vsel %vm234_vm4, %v228_v49, %v249_v0 }
 0x1e5   :  { %v251_v2 = vadd.f32 1e-06, %v250_v1 }
 0x1e7   :  { %253 = vst.msk [vmem:[#allocation3] sm:$0x2] %vm252_vm5, %v251_v2 }
 0x1e8   :  { %333 = shalt.err (!%p330_p4)
}
 0x1e9   :  { %263 = dma.vmem_to_hbm [thread:$0]  %s261_s3, 32, %s501_s5, [#allocation4]  }
 0x1ea   :  { %342 = dma.done.wait [#allocation4], 32  }
 0x1eb   :  { %343 = vsyncadd [#allocation4], 4294967264 }
 0x1ec   :  { %267 = vsyncpa [#allocation4], 1 }

</bundles_post_ra>
